<compile_context>
chip_gen: v7x
topology: tpu7x:2x2x1
jax: 0.10.0
libtpu: 0.0.40
codegen_flags: <defaults>
</compile_context>

<pallas_src>
import numpy as np

import jax
import jax.numpy as jnp
from jax.experimental import pallas as pl
from jax.experimental.pallas import tpu as pltpu


def _make_gather_kernel(joint_maps, d):
    """Build a kernel that copies the (static) joint_maps rows, run-coalesced.

    The kernel operates on flattened tiles:
      x_ref: (tB, J*D)   source batch tile (VMEM)
      o_ref: (tB, M*D)   gathered batch tile (VMEM)
    Each output row i takes lanes [jm[i]*D, (jm[i]+1)*D) of the source.
    Consecutive source rows are merged into a single wide copy so identity-like
    maps become a few large, mostly unmasked lane-dense stores.
    """
    runs = []  # (dst_row, src_row, run_length)
    i, m = 0, len(joint_maps)
    while i < m:
        j = joint_maps[i]
        run = 1
        while i + run < m and joint_maps[i + run] == j + run:
            run += 1
        runs.append((i, j, run))
        i += run

    def kernel(x_ref, o_ref):
        for dst, src, run in runs:  # all-static slices -> plain vld/vst copies
            o_ref[:, dst * d:(dst + run) * d] = x_ref[:, src * d:(src + run) * d]

    return kernel


def _pick_batch_block(b, row_bytes, batch_block, budget_bytes):
    """Batch-tile size: full batch if it fits the budget, else a multiple of 8
    (second-minor block dims must be 8-divisible unless they span the array)."""
    if batch_block is not None:
        tb = min(int(batch_block), b)
    else:
        tb = min(b, max(1, budget_bytes // max(1, row_bytes)))
    if tb < b:
        tb = max(8, (tb // 8) * 8)
    return min(tb, b)


def joint_mapper(joints, joint_maps=None, *, batch_block=None,
                 vmem_budget_bytes=4 * 1024 * 1024):
    """Pallas equivalent of JointMapper.forward.

    joints:     (B, J, D) array.
    joint_maps: static 1-D integer sequence of length M (or None -> identity).
    returns:    (B, M, D) = joints[:, joint_maps, :]
    """
    if joint_maps is None:
        return joints

    B, J, D = joints.shape
    jm = np.asarray(joint_maps).reshape(-1)
    M = int(jm.size)
    if np.any(jm < 0) or np.any(jm >= J):
        # torch.index_select raises on out-of-range indices; do the same here
        # rather than letting a DMA read out of bounds.
        raise ValueError(f"joint_maps values must be in [0, {J}), got {jm}")
    jm = tuple(int(v) for v in jm)

    # Free reshapes (contiguous minor-dim collapse): lane-dense 2-D layout,
    # no extra HBM passes / transposes.
    x2 = joints.reshape(B, J * D)

    itemsize = joints.dtype.itemsize
    row_bytes = (J + M) * D * itemsize          # in + out bytes per batch row
    tB = _pick_batch_block(B, row_bytes, batch_block, vmem_budget_bytes)
    grid = (pl.cdiv(B, tB),)

    out2 = pl.pallas_call(
        _make_gather_kernel(jm, D),
        out_shape=jax.ShapeDtypeStruct((B, M * D), joints.dtype),
        grid=grid,
        in_specs=[pl.BlockSpec((tB, J * D), lambda b: (b, 0))],
        out_specs=pl.BlockSpec((tB, M * D), lambda b: (b, 0)),
        compiler_params=pltpu.CompilerParams(
            dimension_semantics=("parallel",),   # batch tiles are independent
        ),
    )(x2)

    return out2.reshape(B, M, D)


class JointMapper:
    """Mirrors the PyTorch module: joint_maps is fixed at construction."""

    def __init__(self, joint_maps=None):
        if joint_maps is None:
            self.joint_maps = None
        else:
            self.joint_maps = tuple(
                int(v) for v in np.asarray(joint_maps).reshape(-1))

    def __call__(self, joints, **kwargs):
        return joint_mapper(joints, self.joint_maps)


if __name__ == "__main__":
    key = jax.random.PRNGKey(0)
    k1, k2 = jax.random.split(key)

    # --- Test 1: module forward at small shapes (batch=2, joints=16, dim=3).
    B, J, D = 2, 16, 3
    joints = jax.random.normal(k1, (B, J, D), dtype=jnp.float32)
    joint_maps = [5, 0, 3, 7, 2, 10, 1, 15]          # fixed buffer, as in __init__
    mapper = JointMapper(joint_maps)
    out = jax.block_until_ready(mapper(joints))
    ref = jnp.take(joints, jnp.asarray(joint_maps, dtype=jnp.int32), axis=1)
    assert out.shape == (B, len(joint_maps), D)
    assert out.dtype == joints.dtype
    assert jnp.array_equal(out, ref)

    # --- Test 2: batch tiling over multiple grid steps (B=16, tile=8) with a
    # map containing contiguous runs and a duplicate (exercises coalescing).
    B2 = 16
    joints2 = jax.random.normal(k2, (B2, J, D), dtype=jnp.float32)
    jm2 = [0, 1, 2, 3, 9, 10, 11, 4, 15, 15]
    out2 = jax.block_until_ready(joint_mapper(joints2, jm2, batch_block=8))
    ref2 = jnp.take(joints2, jnp.asarray(jm2, dtype=jnp.int32), axis=1)
    assert out2.shape == (B2, len(jm2), D)
    assert jnp.array_equal(out2, ref2)

    # --- Test 3: identity path (joint_maps is None).
    ident = jax.block_until_ready(joint_mapper(joints, None))
    assert jnp.array_equal(ident, joints)

    print("KERNEL_OK")
</pallas_src>

<mosaic_0001>
module attributes {stable_mosaic.version = 11 : i64} {
  func.func @kernel(%arg0: i32, %arg1: memref<2x48xf32, #tpu.memory_space<vmem>>, %arg2: memref<2x24xf32, #tpu.memory_space<vmem>>) attributes {dimension_semantics = [#tpu.dimension_semantics<parallel>], iteration_bounds = array<i64: 1>, scalar_prefetch = 0 : i64, scratch_operands = 0 : i64, tpu.core_type = #tpu.core_type<tc>, window_params = [{transform_indices = @transform_0, window_bounds = array<i64: 2, 48>}, {transform_indices = @transform_1, window_bounds = array<i64: 2, 24>}]} {
    %c0 = arith.constant 0 : index
    %c15 = arith.constant 15 : index
    %0 = vector.load %arg1[%c0, %c15] : memref<2x48xf32, #tpu.memory_space<vmem>>, vector<2x3xf32>
    %c0_0 = arith.constant 0 : index
    %c0_1 = arith.constant 0 : index
    %1 = vector.load %arg2[%c0_0, %c0_1] : memref<2x24xf32, #tpu.memory_space<vmem>>, vector<2x3xf32>
    tpu.vector_store %arg2[%c0_0, %c0_1], %0 {strides = array<i32>} : memref<2x24xf32, #tpu.memory_space<vmem>>, vector<2x3xf32>,
    %c0_2 = arith.constant 0 : index
    %c0_3 = arith.constant 0 : index
    %2 = vector.load %arg1[%c0_2, %c0_3] : memref<2x48xf32, #tpu.memory_space<vmem>>, vector<2x3xf32>
    %c0_4 = arith.constant 0 : index
    %c3 = arith.constant 3 : index
    %3 = vector.load %arg2[%c0_4, %c3] : memref<2x24xf32, #tpu.memory_space<vmem>>, vector<2x3xf32>
    tpu.vector_store %arg2[%c0_4, %c3], %2 {strides = array<i32>} : memref<2x24xf32, #tpu.memory_space<vmem>>, vector<2x3xf32>,
    %c0_5 = arith.constant 0 : index
    %c9 = arith.constant 9 : index
    %4 = vector.load %arg1[%c0_5, %c9] : memref<2x48xf32, #tpu.memory_space<vmem>>, vector<2x3xf32>
    %c0_6 = arith.constant 0 : index
    %c6 = arith.constant 6 : index
    %5 = vector.load %arg2[%c0_6, %c6] : memref<2x24xf32, #tpu.memory_space<vmem>>, vector<2x3xf32>
    tpu.vector_store %arg2[%c0_6, %c6], %4 {strides = array<i32>} : memref<2x24xf32, #tpu.memory_space<vmem>>, vector<2x3xf32>,
    %c0_7 = arith.constant 0 : index
    %c21 = arith.constant 21 : index
    %6 = vector.load %arg1[%c0_7, %c21] : memref<2x48xf32, #tpu.memory_space<vmem>>, vector<2x3xf32>
    %c0_8 = arith.constant 0 : index
    %c9_9 = arith.constant 9 : index
    %7 = vector.load %arg2[%c0_8, %c9_9] : memref<2x24xf32, #tpu.memory_space<vmem>>, vector<2x3xf32>
    tpu.vector_store %arg2[%c0_8, %c9_9], %6 {strides = array<i32>} : memref<2x24xf32, #tpu.memory_space<vmem>>, vector<2x3xf32>,
    %c0_10 = arith.constant 0 : index
    %c6_11 = arith.constant 6 : index
    %8 = vector.load %arg1[%c0_10, %c6_11] : memref<2x48xf32, #tpu.memory_space<vmem>>, vector<2x3xf32>
    %c0_12 = arith.constant 0 : index
    %c12 = arith.constant 12 : index
    %9 = vector.load %arg2[%c0_12, %c12] : memref<2x24xf32, #tpu.memory_space<vmem>>, vector<2x3xf32>
    tpu.vector_store %arg2[%c0_12, %c12], %8 {strides = array<i32>} : memref<2x24xf32, #tpu.memory_space<vmem>>, vector<2x3xf32>,
    %c0_13 = arith.constant 0 : index
    %c30 = arith.constant 30 : index
    %10 = vector.load %arg1[%c0_13, %c30] : memref<2x48xf32, #tpu.memory_space<vmem>>, vector<2x3xf32>
    %c0_14 = arith.constant 0 : index
    %c15_15 = arith.constant 15 : index
    %11 = vector.load %arg2[%c0_14, %c15_15] : memref<2x24xf32, #tpu.memory_space<vmem>>, vector<2x3xf32>
    tpu.vector_store %arg2[%c0_14, %c15_15], %10 {strides = array<i32>} : memref<2x24xf32, #tpu.memory_space<vmem>>, vector<2x3xf32>,
    %c0_16 = arith.constant 0 : index
    %c3_17 = arith.constant 3 : index
    %12 = vector.load %arg1[%c0_16, %c3_17] : memref<2x48xf32, #tpu.memory_space<vmem>>, vector<2x3xf32>
    %c0_18 = arith.constant 0 : index
    %c18 = arith.constant 18 : index
    %13 = vector.load %arg2[%c0_18, %c18] : memref<2x24xf32, #tpu.memory_space<vmem>>, vector<2x3xf32>
    tpu.vector_store %arg2[%c0_18, %c18], %12 {strides = array<i32>} : memref<2x24xf32, #tpu.memory_space<vmem>>, vector<2x3xf32>,
    %c0_19 = arith.constant 0 : index
    %c45 = arith.constant 45 : index
    %14 = vector.load %arg1[%c0_19, %c45] : memref<2x48xf32, #tpu.memory_space<vmem>>, vector<2x3xf32>
    %c0_20 = arith.constant 0 : index
    %c21_21 = arith.constant 21 : index
    %15 = vector.load %arg2[%c0_20, %c21_21] : memref<2x24xf32, #tpu.memory_space<vmem>>, vector<2x3xf32>
    tpu.vector_store %arg2[%c0_20, %c21_21], %14 {strides = array<i32>} : memref<2x24xf32, #tpu.memory_space<vmem>>, vector<2x3xf32>,
    return
  }
  func.func @transform_0(%arg0: i32) -> (i32, i32) {
    %c0_i32 = arith.constant 0 : i32
    %c0_i32_0 = arith.constant 0 : i32
    return %arg0, %c0_i32 : i32, i32
  }
  func.func @transform_1(%arg0: i32) -> (i32, i32) {
    %c0_i32 = arith.constant 0 : i32
    %c0_i32_0 = arith.constant 0 : i32
    return %arg0, %c0_i32 : i32, i32
  }
}

</mosaic_0001>

<bundles_post_ra>
// kernel: tpu_custom_call.1
= control target key start
LH: loop header
LB: loop body
LE: loop exit
PB: predicated region body
PF: predicated region fallthrough
CT: control target
= control target key end

     0   :  { %6 = vsyncpa [#allocation3], 0  ;;  %s192_s0 = inlined_call_operand.hbm [shape: f32[2,48], index: 0, kind: input, shape index: {}]   ;;  %s193_s1 = inlined_call_operand.hbm [shape: f32[2,24], index: 1, kind: output, shape index: {}]  }
   0x1   :  { %7 = vsyncpa [#allocation4], 0  ;;  %s149_s6 = smov [#allocation2]   ;;  %s101_s10 = scalar_lea.hbm %s192_s0, 32 }
   0x2   :  { %s14_s7 = sshll.u32 %s149_s6, 4  ;;  %p102_p0 = scmp.ne.s32.totalorder %s192_s0, %s101_s10  ;;  %s15_s7 = int_to_ptr.vmem [resolvable:$true] %s14_s7 }
   0x3   :  { %p105_p1 = scmp.lt.u32.totalorder %s101_s10, %s192_s0 }
   0x5   :  { %p107_p2 = pnand %p105_p1, %p102_p0 }
   0x7   :  { %110 = shalt.err (!%p107_p2)
}
   0x8   :  { %s111_s15 = scalar_lea.vmem %s15_s7, 32  ;;  %p116_p4 = scmp.lt.s32.totalorder %s15_s7, %s15_s7 }
   0x9   :  { %p112_p3 = scmp.ne.s32.totalorder %s15_s7, %s111_s15  ;;  %p117_p5 = scmp.lt.s32.totalorder %s111_s15, %s111_s15 }
   0xb   :  { %p118_p6 = por %p117_p5, %p116_p4 }
   0xd   :  { %p119_p7 = pnand %p118_p6, %p112_p3 }
   0xf   :  { %122 = shalt.err (!%p119_p7)
}
  0x10   :  { %17 = dma.hbm_to_vmem [thread:$0]  %s192_s0, 32, %s15_s7, [#allocation3]  }
  0x11   :  { %145 = dma.done.wait [#allocation3], 32  }
  0x12   :  { %146 = vsyncadd [#allocation3], 4294967264  ;;  %v21_v0 = vld [vmem:[#allocation2] sm:$0x3]  ;;  %s150_s18 = smov 113   ;;  %s151_s19 = smov 125  }
  0x13   :  { %v35_v1 = vld [vmem:[#allocation2] sm:$0x3]  ;;  %23 = vrot.lane.b32.xlu0 %v21_v0, %s150_s18  ;;  %s152_s20 = smov 3   ;;  %s153_s21 = smov 116   ;;  %vm26_vm0 = vcmask 17408   ;;  %vm33_vm1 = vcmask 42008  }
  0x14   :  { %37 = vrot.lane.b32.xlu1 %v35_v1, %s151_s19  ;;  %v28_v2 = vld [vmem:[#allocation2] sm:$0x3]  ;;  %s154_s22 = smov 6   ;;  %s155_s0 = smov 15   ;;  %vm40_vm2 = vcmask 66608   ;;  %vm47_vm3 = vcmask 91208  }
  0x15   :  { %v42_v3 = vld [vmem:[#allocation2] sm:$0x3]  ;;  %s156_s23 = smov 104   ;;  %vm54_vm4 = vcmask 115808   ;;  %vm61_vm5 = vcmask 140408   ;;  %s157_s24 = smov [#allocation5]  }
  0x16   :  { %v49_v4 = vld [vmem:[#allocation2] sm:$0x3]  ;;  %s83_s25 = sshll.u32 %s157_s24, 4  ;;  %vm68_vm6 = vcmask 165008   ;;  %vm75_vm7 = vcmask 189608   ;;  %s84_s25 = int_to_ptr.vmem [resolvable:$true] %s83_s25 }
  0x17   :  { %30 = vrot.lane.b32.xlu0 %v28_v2, %s152_s20  ;;  %v56_v5 = vld [vmem:[#allocation2] sm:$0x3]  ;;  %s123_s26 = scalar_lea.vmem %s84_s25, 32  ;;  %p128_p9 = scmp.lt.s32.totalorder %s84_s25, %s84_s25 }
  0x18   :  { %44 = vrot.lane.b32.xlu1 %v42_v3, %s153_s21  ;;  %v63_v6 = vld [vmem:[#allocation2] sm:$0x3]  ;;  %p124_p8 = scmp.ne.s32.totalorder %s84_s25, %s123_s26  ;;  %p129_p10 = scmp.lt.s32.totalorder %s123_s26, %s123_s26 }
  0x19   :  { %v70_v7 = vld [vmem:[#allocation2] sm:$0x3] }
  0x1a   :  { %p130_p11 = por %p129_p10, %p128_p9 }
  0x1b   :  { %51 = vrot.lane.b32.xlu0 %v49_v4, %s154_s22 }
  0x1c   :  { %58 = vrot.lane.b32.xlu1 %v56_v5, %s150_s18  ;;  %p131_p12 = pnand %p130_p11, %p124_p8 }
  0x1f   :  { %65 = vrot.lane.b32.xlu0 %v63_v6, %s155_s0 }
  0x20   :  { %72 = vrot.lane.b32.xlu1 %v70_v7, %s156_s23 }
  0x85   :  { %v24_v8 = vpop.permute.xlu0 %23 }
  0x86   :  { %v38_v9 = vpop.permute.xlu1 %37  ;;  %27 = vst.msk [vmem:[#allocation5] sm:$0x3] %vm26_vm0, %v24_v8 }
  0x89   :  { %v31_v10 = vpop.permute.xlu0 %30 }
  0x8a   :  { %v45_v11 = vpop.permute.xlu1 %44  ;;  %34 = vst.msk [vmem:[#allocation5] sm:$0x3] %vm33_vm1, %v31_v10 }
  0x8b   :  { %41 = vst.msk [vmem:[#allocation5] sm:$0x3] %vm40_vm2, %v38_v9 }
  0x8c   :  { %48 = vst.msk [vmem:[#allocation5] sm:$0x3] %vm47_vm3, %v45_v11 }
  0x8d   :  { %v52_v12 = vpop.permute.xlu0 %51 }
  0x8e   :  { %v59_v13 = vpop.permute.xlu1 %58  ;;  %55 = vst.msk [vmem:[#allocation5] sm:$0x3] %vm54_vm4, %v52_v12 }
  0x8f   :  { %62 = vst.msk [vmem:[#allocation5] sm:$0x3] %vm61_vm5, %v59_v13 }
  0x91   :  { %v66_v14 = vpop.permute.xlu0 %65 }
  0x92   :  { %v73_v15 = vpop.permute.xlu1 %72  ;;  %69 = vst.msk [vmem:[#allocation5] sm:$0x3] %vm68_vm6, %v66_v14 }
  0x93   :  { %76 = vst.msk [vmem:[#allocation5] sm:$0x3] %vm75_vm7, %v73_v15 }
  0x94   :  { %134 = shalt.err (!%p131_p12)
}
  0x95   :  { %s135_s29 = scalar_lea.hbm %s193_s1, 32 }
  0x96   :  { %p136_p13 = scmp.ne.s32.totalorder %s193_s1, %s135_s29  ;;  %p139_p0 = scmp.lt.u32.totalorder %s135_s29, %s193_s1 }
  0x98   :  { %p141_p1 = pnand %p139_p0, %p136_p13 }
  0x9a   :  { %144 = shalt.err (!%p141_p1)
}
  0x9b   :  { %86 = dma.vmem_to_hbm [thread:$0]  %s84_s25, 32, %s193_s1, [#allocation4]  }
  0x9c   :  { %147 = dma.done.wait [#allocation4], 32  }
  0x9d   :  { %148 = vsyncadd [#allocation4], 4294967264 }
  0x9e   :  { %90 = vsyncpa [#allocation3], 1 }
  0x9f   :  { %91 = vsyncpa [#allocation4], 1 }

</bundles_post_ra>
